<compile_context>
chip_gen: v5e
topology: v5e:2x2
jax: 0.10.0
libtpu: 0.0.40
codegen_flags: <defaults>
</compile_context>

<pallas_src>
import functools

import jax
import jax.numpy as jnp
from jax.experimental import pallas as pl
from jax.experimental.pallas import tpu as pltpu

_LANES = 128       # lane width (last dim)
_SUBLANES = 8      # sublane width (second-to-last dim)
_BN_EPS = 1e-5
# Explicit VMEM budget: safe on every generation (v5e scoped default is only 16 MiB,
# v7x physical VMEM is 64 MiB).  The tiles below sit far under this.
_VMEM_LIMIT = 32 * 1024 * 1024


def _round_up(x, m):
    return (x + m - 1) // m * m


def _mosaic_params():
    return pltpu.CompilerParams(
        dimension_semantics=("parallel",),   # M-tiles are independent (v7x: 2 TCs)
        vmem_limit_bytes=_VMEM_LIMIT,
    )


# ----------------------------------------------------------------------------
# Pallas kernels
# ----------------------------------------------------------------------------
def _conv_stats_kernel(taps_ref, w_ref, conv_ref, sum_ref, ssq_ref):
    """Pass 1: one MXU matmul per M-tile + per-tile BN partial statistics.

    taps_ref : (TM, K)        K = 9*Cin_p, bf16/f32 (streamed, double-buffered)
    w_ref    : (K, Cout_p)    VMEM-resident across the grid (constant index_map)
    conv_ref : (TM, Cout_p)   f32 pre-BN conv output tile
    sum_ref  : (8, Cout_p)    per-tile per-channel sum  (row-broadcast)
    ssq_ref  : (8, Cout_p)    per-tile per-channel sum of squares
    """
    acc = jnp.dot(taps_ref[...], w_ref[...], preferred_element_type=jnp.float32)
    conv_ref[...] = acc
    c = acc.shape[-1]
    sum_ref[...] = jnp.broadcast_to(jnp.sum(acc, axis=0, keepdims=True), (_SUBLANES, c))
    ssq_ref[...] = jnp.broadcast_to(jnp.sum(acc * acc, axis=0, keepdims=True), (_SUBLANES, c))


def _bn_relu_kernel(conv_ref, scale_ref, shift_ref, out_ref):
    """Pass 2 (no residual): y = relu(conv*scale + shift)."""
    y = conv_ref[...] * scale_ref[...] + shift_ref[...]
    out_ref[...] = jnp.maximum(y, 0.0).astype(out_ref.dtype)


def _bn_relu_add_kernel(conv_ref, scale_ref, shift_ref, res_ref, out_ref):
    """Pass 2 (with residual): y = relu(conv*scale + shift) + residual."""
    y = conv_ref[...] * scale_ref[...] + shift_ref[...]
    out_ref[...] = (jnp.maximum(y, 0.0) + res_ref[...]).astype(out_ref.dtype)


# ----------------------------------------------------------------------------
# pallas_call wrappers
# ----------------------------------------------------------------------------
def conv_stats(taps2d, w2d, tm):
    """taps2d (M_pad, K), w2d (K, Cout_p) -> conv (M_pad, Cout_p), sum/ssq (nt*8, Cout_p)."""
    m_pad, k = taps2d.shape
    cout_p = w2d.shape[-1]
    nt = m_pad // tm
    return pl.pallas_call(
        _conv_stats_kernel,
        out_shape=(
            jax.ShapeDtypeStruct((m_pad, cout_p), jnp.float32),
            jax.ShapeDtypeStruct((nt * _SUBLANES, cout_p), jnp.float32),
            jax.ShapeDtypeStruct((nt * _SUBLANES, cout_p), jnp.float32),
        ),
        grid=(nt,),
        in_specs=[
            pl.BlockSpec((tm, k), lambda i: (i, 0)),        # streamed tap tiles
            pl.BlockSpec((k, cout_p), lambda i: (0, 0)),    # resident weights
        ],
        out_specs=(
            pl.BlockSpec((tm, cout_p), lambda i: (i, 0)),
            pl.BlockSpec((_SUBLANES, cout_p), lambda i: (i, 0)),
            pl.BlockSpec((_SUBLANES, cout_p), lambda i: (i, 0)),
        ),
        compiler_params=_mosaic_params(),
    )(taps2d, w2d)


def bn_relu_apply(conv, scale, shift, residual, tm):
    """conv (M_pad, Cout_p) f32; scale/shift (1, Cout_p) f32; residual (M_pad, Cout_p) or None."""
    m_pad, cout_p = conv.shape
    nt = m_pad // tm
    tile = pl.BlockSpec((tm, cout_p), lambda i: (i, 0))
    chan = pl.BlockSpec((1, cout_p), lambda i: (0, 0))       # resident across grid
    if residual is None:
        kernel, args, in_specs = _bn_relu_kernel, (conv, scale, shift), [tile, chan, chan]
    else:
        kernel = _bn_relu_add_kernel
        args = (conv, scale, shift, residual)
        in_specs = [tile, chan, chan, tile]
    return pl.pallas_call(
        kernel,
        out_shape=jax.ShapeDtypeStruct((m_pad, cout_p), jnp.float32),
        grid=(nt,),
        in_specs=in_specs,
        out_specs=tile,
        compiler_params=_mosaic_params(),
    )(*args)


# ----------------------------------------------------------------------------
# JAX glue: folded im2col, weight prep, BN fold
# ----------------------------------------------------------------------------
def _extract_taps_folded(x_nhwc, stride, cin_p, compute_dtype):
    """im2col (pad=1, k=3) with the 9 taps folded into the contraction dim: (M, 9*cin_p)."""
    n, h, w, c = x_nhwc.shape
    ho = (h + 2 - 3) // stride + 1
    wo = (w + 2 - 3) // stride + 1
    xp = jnp.pad(x_nhwc, ((0, 0), (1, 1), (1, 1), (0, cin_p - c)))
    taps = []
    for ky in range(3):
        for kx in range(3):
            t = xp[:, ky:ky + stride * (ho - 1) + 1:stride,
                     kx:kx + stride * (wo - 1) + 1:stride, :]
            taps.append(t.reshape(n * ho * wo, cin_p))
    return jnp.concatenate(taps, axis=1).astype(compute_dtype), (n, ho, wo)


def _prep_weight(w_oihw, cin_p, cout_p, compute_dtype):
    """(Cout, Cin, 3, 3) -> (9*cin_p, cout_p): zero-padded, matmul-ready (prepared once,
    outside the tiled grid; kept VMEM-resident by the constant index_map)."""
    cout, cin, _, _ = w_oihw.shape
    w = jnp.transpose(w_oihw, (2, 3, 1, 0))                       # (3, 3, Cin, Cout)
    w = jnp.pad(w, ((0, 0), (0, 0), (0, cin_p - cin), (0, cout_p - cout)))
    return w.reshape(9 * cin_p, cout_p).astype(compute_dtype)


def _pad_rows(a, rows):
    return a if a.shape[0] == rows else jnp.pad(a, ((0, rows - a.shape[0]), (0, 0)))


def _bn_fold(sum_out, ssq_out, m_real, gamma_p, beta_p):
    """Merge per-tile partial sums -> per-channel (scale, shift) for the apply pass.
    Zero-padded rows/channels contribute 0 to the sums, so statistics over the real
    M rows are exact (divide by m_real)."""
    cout_p = sum_out.shape[-1]
    s = jnp.sum(sum_out.reshape(-1, _SUBLANES, cout_p)[:, 0, :], axis=0)
    q = jnp.sum(ssq_out.reshape(-1, _SUBLANES, cout_p)[:, 0, :], axis=0)
    mean = s / m_real
    # TODO(synk): E[x^2]-E[x]^2 in f32 can lose precision for very large M; use a
    #             Welford-style tile merge for production sizes.
    var = jnp.maximum(q / m_real - mean * mean, 0.0)
    scale = gamma_p * jax.lax.rsqrt(var + _BN_EPS)
    shift = beta_p - mean * scale
    return (scale.reshape(1, cout_p).astype(jnp.float32),
            shift.reshape(1, cout_p).astype(jnp.float32))


# ----------------------------------------------------------------------------
# ResNetBlock / ResNetStage forward (NHWC internally)
# ----------------------------------------------------------------------------
def resnet_block_forward(x_nhwc, p, in_size, in_ch, out_size, out_ch, *, tm, compute_dtype):
    assert out_ch == in_ch or out_ch == 2 * in_ch, (
        "shortcut supports out_ch == in_ch or out_ch == 2*in_ch only")
    stride = 2 if out_size == in_size // 2 else 1
    cin1_p = _round_up(in_ch, _SUBLANES)
    cin2_p = _round_up(out_ch, _SUBLANES)
    cout_p = _round_up(out_ch, _LANES)       # lane-dense output channels

    # Weight / BN parameter prep, hoisted out of the tiled kernels (done once).
    w1 = _prep_weight(p["w1"], cin1_p, cout_p, compute_dtype)
    w2 = _prep_weight(p["w2"], cin2_p, cout_p, compute_dtype)
    g1 = jnp.pad(p["g1"], (0, cout_p - out_ch))
    b1 = jnp.pad(p["b1"], (0, cout_p - out_ch))
    g2 = jnp.pad(p["g2"], (0, cout_p - out_ch))
    b2 = jnp.pad(p["b2"], (0, cout_p - out_ch))

    # ---- sandwich1: conv(stride) + BN + ReLU (no zero residual streamed) ----
    taps1, (n, ho, wo) = _extract_taps_folded(x_nhwc, stride, cin1_p, compute_dtype)
    m = n * ho * wo
    tm_eff = min(tm, _round_up(m, _SUBLANES))
    m_pad = _round_up(m, tm_eff)
    conv1, s1, q1 = conv_stats(_pad_rows(taps1, m_pad), w1, tm_eff)
    scale1, shift1 = _bn_fold(s1, q1, m, g1, b1)
    y1 = bn_relu_apply(conv1, scale1, shift1, None, tm_eff)
    y1_nhwc = y1[:m, :out_ch].reshape(n, ho, wo, out_ch)

    # ---- shortcut (pure data movement): channel zero-pad + 2x2 avg-pool ----
    residual = x_nhwc
    if out_ch == in_ch * 2:
        pd = in_ch // 2
        residual = jnp.pad(residual, ((0, 0), (0, 0), (0, 0), (pd, pd)))
    if out_size == in_size // 2:
        residual = 0.25 * (residual[:, 0::2, 0::2, :] + residual[:, 1::2, 0::2, :]
                           + residual[:, 0::2, 1::2, :] + residual[:, 1::2, 1::2, :])
    res = residual.reshape(m, out_ch).astype(jnp.float32)
    res = jnp.pad(res, ((0, m_pad - m), (0, cout_p - out_ch)))

    # ---- sandwich2: conv(stride=1) + BN + ReLU + fused residual add ----
    taps2, _ = _extract_taps_folded(y1_nhwc, 1, cin2_p, compute_dtype)
    conv2, s2, q2 = conv_stats(_pad_rows(taps2, m_pad), w2, tm_eff)
    scale2, shift2 = _bn_fold(s2, q2, m, g2, b2)
    y2 = bn_relu_apply(conv2, scale2, shift2, res, tm_eff)
    return y2[:m, :out_ch].reshape(n, ho, wo, out_ch)


def resnet_stage_forward(x_nchw, params, in_size, in_ch, out_size, out_ch, *,
                         tm=256, compute_dtype=jnp.bfloat16):
    assert tm % _SUBLANES == 0
    x = jnp.transpose(x_nchw, (0, 2, 3, 1)).astype(jnp.float32)   # NCHW -> NHWC
    cur_size, cur_ch = in_size, in_ch
    for p in params:
        x = resnet_block_forward(x, p, cur_size, cur_ch, out_size, out_ch,
                                 tm=tm, compute_dtype=compute_dtype)
        cur_size, cur_ch = out_size, out_ch
    return jnp.transpose(x, (0, 3, 1, 2))                          # back to NCHW


# ----------------------------------------------------------------------------
# Deterministic parameter init (conv weights random, BN gamma=1 beta=0)
# ----------------------------------------------------------------------------
def init_stage_params(key, in_channels, out_channels, repeat_times):
    params = []
    for i in range(repeat_times):
        cin = in_channels if i == 0 else out_channels
        key, k1, k2 = jax.random.split(key, 3)
        w1 = jax.random.normal(k1, (out_channels, cin, 3, 3), jnp.float32)
        w1 = w1 * (1.0 / jnp.sqrt(jnp.float32(cin * 9)))
        w2 = jax.random.normal(k2, (out_channels, out_channels, 3, 3), jnp.float32)
        w2 = w2 * (1.0 / jnp.sqrt(jnp.float32(out_channels * 9)))
        params.append(dict(
            w1=w1, w2=w2,
            g1=jnp.ones((out_channels,), jnp.float32),
            b1=jnp.zeros((out_channels,), jnp.float32),
            g2=jnp.ones((out_channels,), jnp.float32),
            b2=jnp.zeros((out_channels,), jnp.float32),
        ))
    return params


# ----------------------------------------------------------------------------
# Pure-JAX reference (numerical sanity check)
# ----------------------------------------------------------------------------
def _conv_ref(x_nhwc, w_oihw, stride):
    w_hwio = jnp.transpose(w_oihw, (2, 3, 1, 0))
    return jax.lax.conv_general_dilated(
        x_nhwc, w_hwio, window_strides=(stride, stride), padding=((1, 1), (1, 1)),
        dimension_numbers=("NHWC", "HWIO", "NHWC"),
        precision=jax.lax.Precision.HIGHEST)


def _bn_relu_ref(y, gamma, beta, eps=_BN_EPS):
    mean = y.mean(axis=(0, 1, 2), keepdims=True)
    var = jnp.square(y - mean).mean(axis=(0, 1, 2), keepdims=True)
    yn = (y - mean) * jax.lax.rsqrt(var + eps)
    yn = yn * gamma.reshape(1, 1, 1, -1) + beta.reshape(1, 1, 1, -1)
    return jnp.maximum(yn, 0.0)


def _block_ref(x_nhwc, p, in_size, in_ch, out_size, out_ch):
    stride = 2 if out_size == in_size // 2 else 1
    y = _bn_relu_ref(_conv_ref(x_nhwc, p["w1"], stride), p["g1"], p["b1"])
    y = _bn_relu_ref(_conv_ref(y, p["w2"], 1), p["g2"], p["b2"])
    residual = x_nhwc
    if out_ch == in_ch * 2:
        pd = in_ch // 2
        residual = jnp.pad(residual, ((0, 0), (0, 0), (0, 0), (pd, pd)))
    if out_size == in_size // 2:
        residual = 0.25 * (residual[:, 0::2, 0::2, :] + residual[:, 1::2, 0::2, :]
                           + residual[:, 0::2, 1::2, :] + residual[:, 1::2, 1::2, :])
    return residual + y


def stage_ref(x_nchw, params, in_size, in_ch, out_size, out_ch):
    x = jnp.transpose(x_nchw, (0, 2, 3, 1)).astype(jnp.float32)
    cur_size, cur_ch = in_size, in_ch
    for p in params:
        x = _block_ref(x, p, cur_size, cur_ch, out_size, out_ch)
        cur_size, cur_ch = out_size, out_ch
    return jnp.transpose(x, (0, 3, 1, 2))


# ----------------------------------------------------------------------------
if __name__ == "__main__":
    key = jax.random.PRNGKey(0)
    kx, kp = jax.random.split(key)

    # ResNetStage(in_size=16, in_channels=4, out_size=8, out_channels=8, repeat_times=2)
    N, in_ch, in_size = 2, 4, 16
    out_ch, out_size, repeat_times = 8, 8, 2

    x = jax.random.normal(kx, (N, in_ch, in_size, in_size), jnp.float32)   # NCHW
    params = init_stage_params(kp, in_ch, out_ch, repeat_times)

    # tm=64 so the toy M=128 exercises a real multi-step (double-buffered) grid.
    fwd_bf16 = jax.jit(functools.partial(
        resnet_stage_forward, in_size=in_size, in_ch=in_ch, out_size=out_size,
        out_ch=out_ch, tm=64, compute_dtype=jnp.bfloat16))
    fwd_f32 = jax.jit(functools.partial(
        resnet_stage_forward, in_size=in_size, in_ch=in_ch, out_size=out_size,
        out_ch=out_ch, tm=64, compute_dtype=jnp.float32))

    ref = jax.block_until_ready(stage_ref(x, params, in_size, in_ch, out_size, out_ch))

    # f32 matmul path: matches the reference semantics to tight tolerance.
    out_f32 = jax.block_until_ready(fwd_f32(x, params))
    assert out_f32.shape == (N, out_ch, out_size, out_size), out_f32.shape
    assert bool(jnp.isfinite(out_f32).all())
    assert jnp.allclose(out_f32, ref, atol=3e-2, rtol=3e-2), \
        float(jnp.abs(out_f32 - ref).max())

    # bf16 MXU-input path (default; f32 accumulation + f32 BN): looser tolerance
    # because the f32-precision reference differs at the ~1e-2 level after 4 convs.
    out_bf16 = jax.block_until_ready(fwd_bf16(x, params))
    assert out_bf16.shape == (N, out_ch, out_size, out_size), out_bf16.shape
    assert bool(jnp.isfinite(out_bf16).all())
    assert jnp.allclose(out_bf16, ref, atol=1e-1, rtol=1e-1), \
        float(jnp.abs(out_bf16 - ref).max())

    print("KERNEL_OK")
</pallas_src>

<mosaic_0001>
module attributes {stable_mosaic.version = 11 : i64} {
  func.func @_conv_stats_kernel(%arg0: i32, %arg1: memref<64x72xf32, #tpu.memory_space<vmem>>, %arg2: memref<72x128xf32, #tpu.memory_space<vmem>>, %arg3: memref<64x128xf32, #tpu.memory_space<vmem>>, %arg4: memref<8x128xf32, #tpu.memory_space<vmem>>, %arg5: memref<8x128xf32, #tpu.memory_space<vmem>>) attributes {dimension_semantics = [#tpu.dimension_semantics<parallel>], iteration_bounds = array<i64: 2>, scalar_prefetch = 0 : i64, scratch_operands = 0 : i64, tpu.core_type = #tpu.core_type<tc>, window_params = [{transform_indices = @transform_0, window_bounds = array<i64: 64, 72>}, {pipeline_mode = #tpu.pipeline_mode<synchronous>, transform_indices = @transform_1, window_bounds = array<i64: 72, 128>}, {transform_indices = @transform_2, window_bounds = array<i64: 64, 128>}, {transform_indices = @transform_3, window_bounds = array<i64: 8, 128>}, {transform_indices = @transform_4, window_bounds = array<i64: 8, 128>}]} {
    %c0 = arith.constant 0 : index
    %c0_0 = arith.constant 0 : index
    %0 = vector.load %arg1[%c0, %c0_0] : memref<64x72xf32, #tpu.memory_space<vmem>>, vector<64x72xf32>
    %c0_1 = arith.constant 0 : index
    %c0_2 = arith.constant 0 : index
    %1 = vector.load %arg2[%c0_1, %c0_2] : memref<72x128xf32, #tpu.memory_space<vmem>>, vector<72x128xf32>
    %cst = arith.constant dense<0.000000e+00> : vector<64x128xf32>
    %2 = tpu.matmul %0, %1, %cst {dimension_numbers = #tpu.dot_dimension_numbers<[1], [0], [0], [1], [0, 0, 1, 1], [], []>} : vector<64x72xf32>, vector<72x128xf32>, vector<64x128xf32> -> vector<64x128xf32>
    %c0_3 = arith.constant 0 : index
    %c0_4 = arith.constant 0 : index
    %3 = vector.load %arg3[%c0_3, %c0_4] : memref<64x128xf32, #tpu.memory_space<vmem>>, vector<64x128xf32>
    tpu.vector_store %arg3[%c0_3, %c0_4], %2 {strides = array<i32>} : memref<64x128xf32, #tpu.memory_space<vmem>>, vector<64x128xf32>,
    %cst_5 = arith.constant dense<0.000000e+00> : vector<128xf32>
    %4 = vector.multi_reduction <add>, %2, %cst_5 [0] : vector<64x128xf32> to vector<128xf32>
    %5 = vector.shape_cast %4 : vector<128xf32> to vector<1x128xf32>
    %6 = vector.shape_cast %5 : vector<1x128xf32> to vector<1x128xf32>
    %7 = vector.broadcast %6 : vector<1x128xf32> to vector<8x128xf32>
    %c0_6 = arith.constant 0 : index
    %c0_7 = arith.constant 0 : index
    %8 = vector.load %arg4[%c0_6, %c0_7] : memref<8x128xf32, #tpu.memory_space<vmem>>, vector<8x128xf32>
    tpu.vector_store %arg4[%c0_6, %c0_7], %7 {strides = array<i32>} : memref<8x128xf32, #tpu.memory_space<vmem>>, vector<8x128xf32>,
    %9 = arith.mulf %2, %2 : vector<64x128xf32>
    %cst_8 = arith.constant dense<0.000000e+00> : vector<128xf32>
    %10 = vector.multi_reduction <add>, %9, %cst_8 [0] : vector<64x128xf32> to vector<128xf32>
    %11 = vector.shape_cast %10 : vector<128xf32> to vector<1x128xf32>
    %12 = vector.shape_cast %11 : vector<1x128xf32> to vector<1x128xf32>
    %13 = vector.broadcast %12 : vector<1x128xf32> to vector<8x128xf32>
    %c0_9 = arith.constant 0 : index
    %c0_10 = arith.constant 0 : index
    %14 = vector.load %arg5[%c0_9, %c0_10] : memref<8x128xf32, #tpu.memory_space<vmem>>, vector<8x128xf32>
    tpu.vector_store %arg5[%c0_9, %c0_10], %13 {strides = array<i32>} : memref<8x128xf32, #tpu.memory_space<vmem>>, vector<8x128xf32>,
    return
  }
  func.func @transform_0(%arg0: i32) -> (i32, i32) {
    %c0_i32 = arith.constant 0 : i32
    %c0_i32_0 = arith.constant 0 : i32
    return %arg0, %c0_i32 : i32, i32
  }
  func.func @transform_1(%arg0: i32) -> (i32, i32) {
    %c0_i32 = arith.constant 0 : i32
    %c0_i32_0 = arith.constant 0 : i32
    %c0_i32_1 = arith.constant 0 : i32
    return %c0_i32, %c0_i32_0 : i32, i32
  }
  func.func @transform_2(%arg0: i32) -> (i32, i32) {
    %c0_i32 = arith.constant 0 : i32
    %c0_i32_0 = arith.constant 0 : i32
    return %arg0, %c0_i32 : i32, i32
  }
  func.func @transform_3(%arg0: i32) -> (i32, i32) {
    %c0_i32 = arith.constant 0 : i32
    %c0_i32_0 = arith.constant 0 : i32
    return %arg0, %c0_i32 : i32, i32
  }
  func.func @transform_4(%arg0: i32) -> (i32, i32) {
    %c0_i32 = arith.constant 0 : i32
    %c0_i32_0 = arith.constant 0 : i32
    return %arg0, %c0_i32 : i32, i32
  }
}

module attributes {stable_mosaic.version = 11 : i64} {
  func.func @_bn_relu_kernel(%arg0: i32, %arg1: memref<64x128xf32, #tpu.memory_space<vmem>>, %arg2: memref<1x128xf32, #tpu.memory_space<vmem>>, %arg3: memref<1x128xf32, #tpu.memory_space<vmem>>, %arg4: memref<64x128xf32, #tpu.memory_space<vmem>>) attributes {dimension_semantics = [#tpu.dimension_semantics<parallel>], iteration_bounds = array<i64: 2>, scalar_prefetch = 0 : i64, scratch_operands = 0 : i64, tpu.core_type = #tpu.core_type<tc>, window_params = [{transform_indices = @transform_0, window_bounds = array<i64: 64, 128>}, {pipeline_mode = #tpu.pipeline_mode<synchronous>, transform_indices = @transform_1, window_bounds = array<i64: 1, 128>}, {pipeline_mode = #tpu.pipeline_mode<synchronous>, transform_indices = @transform_2, window_bounds = array<i64: 1, 128>}, {transform_indices = @transform_3, window_bounds = array<i64: 64, 128>}]} {
    %c0 = arith.constant 0 : index
    %c0_0 = arith.constant 0 : index
    %0 = vector.load %arg1[%c0, %c0_0] : memref<64x128xf32, #tpu.memory_space<vmem>>, vector<64x128xf32>
    %c0_1 = arith.constant 0 : index
    %c0_2 = arith.constant 0 : index
    %1 = vector.load %arg2[%c0_1, %c0_2] : memref<1x128xf32, #tpu.memory_space<vmem>>, vector<1x128xf32>
    %2 = vector.broadcast %1 : vector<1x128xf32> to vector<64x128xf32>
    %3 = arith.mulf %0, %2 : vector<64x128xf32>
    %c0_3 = arith.constant 0 : index
    %c0_4 = arith.constant 0 : index
    %4 = vector.load %arg3[%c0_3, %c0_4] : memref<1x128xf32, #tpu.memory_space<vmem>>, vector<1x128xf32>
    %5 = vector.broadcast %4 : vector<1x128xf32> to vector<64x128xf32>
    %6 = arith.addf %3, %5 : vector<64x128xf32>
    %cst = arith.constant 0.000000e+00 : f32
    %7 = vector.broadcast %cst : f32 to vector<64x128xf32>
    %8 = arith.maximumf %6, %7 : vector<64x128xf32>
    %c0_5 = arith.constant 0 : index
    %c0_6 = arith.constant 0 : index
    %9 = vector.load %arg4[%c0_5, %c0_6] : memref<64x128xf32, #tpu.memory_space<vmem>>, vector<64x128xf32>
    tpu.vector_store %arg4[%c0_5, %c0_6], %8 {strides = array<i32>} : memref<64x128xf32, #tpu.memory_space<vmem>>, vector<64x128xf32>,
    return
  }
  func.func @transform_0(%arg0: i32) -> (i32, i32) {
    %c0_i32 = arith.constant 0 : i32
    %c0_i32_0 = arith.constant 0 : i32
    return %arg0, %c0_i32 : i32, i32
  }
  func.func @transform_1(%arg0: i32) -> (i32, i32) {
    %c0_i32 = arith.constant 0 : i32
    %c0_i32_0 = arith.constant 0 : i32
    %c0_i32_1 = arith.constant 0 : i32
    return %c0_i32, %c0_i32_0 : i32, i32
  }
  func.func @transform_2(%arg0: i32) -> (i32, i32) {
    %c0_i32 = arith.constant 0 : i32
    %c0_i32_0 = arith.constant 0 : i32
    %c0_i32_1 = arith.constant 0 : i32
    return %c0_i32, %c0_i32_0 : i32, i32
  }
  func.func @transform_3(%arg0: i32) -> (i32, i32) {
    %c0_i32 = arith.constant 0 : i32
    %c0_i32_0 = arith.constant 0 : i32
    return %arg0, %c0_i32 : i32, i32
  }
}

module attributes {stable_mosaic.version = 11 : i64} {
  func.func @_bn_relu_add_kernel(%arg0: i32, %arg1: memref<64x128xf32, #tpu.memory_space<vmem>>, %arg2: memref<1x128xf32, #tpu.memory_space<vmem>>, %arg3: memref<1x128xf32, #tpu.memory_space<vmem>>, %arg4: memref<64x128xf32, #tpu.memory_space<vmem>>, %arg5: memref<64x128xf32, #tpu.memory_space<vmem>>) attributes {dimension_semantics = [#tpu.dimension_semantics<parallel>], iteration_bounds = array<i64: 2>, scalar_prefetch = 0 : i64, scratch_operands = 0 : i64, tpu.core_type = #tpu.core_type<tc>, window_params = [{transform_indices = @transform_0, window_bounds = array<i64: 64, 128>}, {pipeline_mode = #tpu.pipeline_mode<synchronous>, transform_indices = @transform_1, window_bounds = array<i64: 1, 128>}, {pipeline_mode = #tpu.pipeline_mode<synchronous>, transform_indices = @transform_2, window_bounds = array<i64: 1, 128>}, {transform_indices = @transform_3, window_bounds = array<i64: 64, 128>}, {transform_indices = @transform_4, window_bounds = array<i64: 64, 128>}]} {
    %c0 = arith.constant 0 : index
    %c0_0 = arith.constant 0 : index
    %0 = vector.load %arg1[%c0, %c0_0] : memref<64x128xf32, #tpu.memory_space<vmem>>, vector<64x128xf32>
    %c0_1 = arith.constant 0 : index
    %c0_2 = arith.constant 0 : index
    %1 = vector.load %arg2[%c0_1, %c0_2] : memref<1x128xf32, #tpu.memory_space<vmem>>, vector<1x128xf32>
    %2 = vector.broadcast %1 : vector<1x128xf32> to vector<64x128xf32>
    %3 = arith.mulf %0, %2 : vector<64x128xf32>
    %c0_3 = arith.constant 0 : index
    %c0_4 = arith.constant 0 : index
    %4 = vector.load %arg3[%c0_3, %c0_4] : memref<1x128xf32, #tpu.memory_space<vmem>>, vector<1x128xf32>
    %5 = vector.broadcast %4 : vector<1x128xf32> to vector<64x128xf32>
    %6 = arith.addf %3, %5 : vector<64x128xf32>
    %cst = arith.constant 0.000000e+00 : f32
    %7 = vector.broadcast %cst : f32 to vector<64x128xf32>
    %8 = arith.maximumf %6, %7 : vector<64x128xf32>
    %c0_5 = arith.constant 0 : index
    %c0_6 = arith.constant 0 : index
    %9 = vector.load %arg4[%c0_5, %c0_6] : memref<64x128xf32, #tpu.memory_space<vmem>>, vector<64x128xf32>
    %10 = arith.addf %8, %9 : vector<64x128xf32>
    %c0_7 = arith.constant 0 : index
    %c0_8 = arith.constant 0 : index
    %11 = vector.load %arg5[%c0_7, %c0_8] : memref<64x128xf32, #tpu.memory_space<vmem>>, vector<64x128xf32>
    tpu.vector_store %arg5[%c0_7, %c0_8], %10 {strides = array<i32>} : memref<64x128xf32, #tpu.memory_space<vmem>>, vector<64x128xf32>,
    return
  }
  func.func @transform_0(%arg0: i32) -> (i32, i32) {
    %c0_i32 = arith.constant 0 : i32
    %c0_i32_0 = arith.constant 0 : i32
    return %arg0, %c0_i32 : i32, i32
  }
  func.func @transform_1(%arg0: i32) -> (i32, i32) {
    %c0_i32 = arith.constant 0 : i32
    %c0_i32_0 = arith.constant 0 : i32
    %c0_i32_1 = arith.constant 0 : i32
    return %c0_i32, %c0_i32_0 : i32, i32
  }
  func.func @transform_2(%arg0: i32) -> (i32, i32) {
    %c0_i32 = arith.constant 0 : i32
    %c0_i32_0 = arith.constant 0 : i32
    %c0_i32_1 = arith.constant 0 : i32
    return %c0_i32, %c0_i32_0 : i32, i32
  }
  func.func @transform_3(%arg0: i32) -> (i32, i32) {
    %c0_i32 = arith.constant 0 : i32
    %c0_i32_0 = arith.constant 0 : i32
    return %arg0, %c0_i32 : i32, i32
  }
  func.func @transform_4(%arg0: i32) -> (i32, i32) {
    %c0_i32 = arith.constant 0 : i32
    %c0_i32_0 = arith.constant 0 : i32
    return %arg0, %c0_i32 : i32, i32
  }
}

</mosaic_0001>

<bundles_post_ra>
// kernel: resnet_stage_forward.8
= control target key start
LH: loop header
LB: loop body
LE: loop exit
PB: predicated region body
PF: predicated region fallthrough
CT: control target
= control target key end

     0   :  { %s556_s15 = smov 0   ;;  %s636_s0 = inlined_call_operand.vmem [shape: f32[128,72], index: 0, kind: input, shape index: {}]   ;;  %s637_s1 = inlined_call_operand.vmem [shape: f32[72,128], index: 1, kind: input, shape index: {}]   ;;  %s638_s2 = inlined_call_operand.vmem [shape: f32[128,128], index: 2, kind: output, shape index: {0}]   ;;  %s639_s3 = inlined_call_operand.vmem [shape: f32[16,128], index: 3, kind: output, shape index: {1}]   ;;  %s640_s4 = inlined_call_operand.vmem [shape: f32[16,128], index: 4, kind: output, shape index: {2}]  }
   0x1 LB: > { %s562_s16 = sadd.s32 4294967295, %s529_s15   ;;  %p471_p0 = scmp.ge.s32.totalorder %s529_s15, 1  ;;  %s529_s15 = sphi %s556_s15, %s15_s15  }
   0x2   : > { %p168_p1 = scmp.lt.s32.totalorder %s529_s15, 3 }
   0x4   : > { %p169_p2 = pnand %p471_p0, %p168_p1 }
   0x5   : > { %s472_s21 = sshll.u32 (!%p169_p2), %s562_s16, 3  ;;  %p214_p4 = scmp.lt.s32.totalorder (!%p169_p2), %s562_s16, 1 }
   0x6   : > { %172 = sbr.rel (%p169_p2) target bundleno = 192 (0xc0), region = 28  ;;  %p203_p3 = scmp.lt.s32.totalorder (!%p169_p2), %s472_s21, 15 }
   0xb   : > { %v238_v0 = vld [vmem:[%s637_s1 + $0x40] sm:$0xff]  ;;  %v237_v1 = vld [vmem:[%s637_s1 + $0x38] sm:$0xff]  ;;  %v236_v2 = vld [vmem:[%s637_s1 + $0x30] sm:$0xff]  ;;  %s642_s21 = smov (!%p203_p3, %s472_s21), 15  ;;  %vm239_vm0 = vcmask 588800   ;;  %s644_s16 = smov (!%p214_p4, %s562_s16), 1 }
   0xc   : > { %271 = vmatpush.msra.mxu0 %v238_v0  ;;  %489 = vmatpush.msra.mxu2 %v238_v0  ;;  %v235_v3 = vld [vmem:[%s637_s1 + $0x28] sm:$0xff]  ;;  %v234_v4 = vld [vmem:[%s637_s1 + $0x20] sm:$0xff]  ;;  %v233_v5 = vld [vmem:[%s637_s1 + $0x18] sm:$0xff]  ;;  %s473_s30 = sshll.u32 %s642_s21, 3  ;;  %s476_s19 = sshll.u32 %s644_s16, 3 }
   0xd   : > { %488 = vmatpush.msra.mxu1 %v238_v0  ;;  %490 = vmatpush.msra.mxu3 %v238_v0  ;;  %v232_v6 = vld [vmem:[%s637_s1 + $0x10] sm:$0xff]  ;;  %v231_v7 = vld [vmem:[%s637_s1 + $0x8] sm:$0xff]  ;;  %s206_s11 = scalar_lea.vmem %s636_s0, %s473_s30  ;;  %v230_v8 = vld [vmem:[%s637_s1] sm:$0xff]  ;;  %s615_s18 = scalar_lea.vmem %s638_s2, %s473_s30 }
   0xe   : > { %272 = vmatpush.msra.mxu0 %v237_v1  ;;  %492 = vmatpush.msra.mxu2 %v237_v1  ;;  %v222_v9 = vld [vmem:[%s206_s11] sm:$0xff]  ;;  %v224_v11 = vld [vmem:[%s206_s11 + $0x10] sm:$0xff]  ;;  %v223_v13 = vld [vmem:[%s206_s11 + $0x8] sm:$0xff]  ;;  %s217_s22 = scalar_lea.vmem %s639_s3, %s476_s19  ;;  %s221_s25 = scalar_lea.vmem %s640_s4, %s476_s19 }
   0xf   : > { %491 = vmatpush.msra.mxu1 %v237_v1  ;;  %493 = vmatpush.msra.mxu3 %v237_v1  ;;  %v226_v10 = vld [vmem:[%s206_s11 + $0x20] sm:$0xff]  ;;  %v228_v12 = vld [vmem:[%s206_s11 + $0x30] sm:$0xff]  ;;  %v227_v14 = vld [vmem:[%s206_s11 + $0x28] sm:$0xff] }
  0x10   : > { %273 = vmatpush.msra.mxu0 %v236_v2  ;;  %495 = vmatpush.msra.mxu2 %v236_v2  ;;  %v225_v15 = vld [vmem:[%s206_s11 + $0x18] sm:$0xff] }
  0x11   : > { %494 = vmatpush.msra.mxu1 %v236_v2  ;;  %496 = vmatpush.msra.mxu3 %v236_v2  ;;  %v229_v16 = vld [vmem:[%s206_s11 + $0x38] sm:$0xff] }
  0x12   : > { %274 = vmatpush.msra.mxu0 %v235_v3  ;;  %498 = vmatpush.msra.mxu2 %v235_v3 }
  0x13   : > { %497 = vmatpush.msra.mxu1 %v235_v3  ;;  %499 = vmatpush.msra.mxu3 %v235_v3 }
  0x14   : > { %275 = vmatpush.msra.mxu0 %v234_v4  ;;  %501 = vmatpush.msra.mxu2 %v234_v4 }
  0x15   : > { %500 = vmatpush.msra.mxu1 %v234_v4  ;;  %502 = vmatpush.msra.mxu3 %v234_v4 }
  0x16   : > { %276 = vmatpush.msra.mxu0 %v233_v5  ;;  %504 = vmatpush.msra.mxu2 %v233_v5 }
  0x17   : > { %503 = vmatpush.msra.mxu1 %v233_v5  ;;  %505 = vmatpush.msra.mxu3 %v233_v5 }
  0x18   : > { %277 = vmatpush.msra.mxu0 %v232_v6  ;;  %507 = vmatpush.msra.mxu2 %v232_v6 }
  0x19   : > { %506 = vmatpush.msra.mxu1 %v232_v6  ;;  %508 = vmatpush.msra.mxu3 %v232_v6 }
  0x1a   : > { %278 = vmatpush.msra.mxu0 %v231_v7  ;;  %510 = vmatpush.msra.mxu2 %v231_v7 }
  0x1b   : > { %509 = vmatpush.msra.mxu1 %v231_v7  ;;  %511 = vmatpush.msra.mxu3 %v231_v7 }
  0x1c   : > { %279 = vmatpush.msra.mxu0 %v230_v8  ;;  %513 = vmatpush.msra.mxu2 %v230_v8 }
  0x1d   : > { %478 = vmatmul.msk.f32.vlgmr.msra.gmra.mxu0 %vm239_vm0, %v222_v9  ;;  %482 = vmatmul.msk.f32.vlgmr.msra.gmra.mxu2 %vm239_vm0, %v226_v10 }
  0x1e   : > { %512 = vmatpush.msra.mxu1 %v230_v8  ;;  %514 = vmatpush.msra.mxu3 %v230_v8 }
  0x1f   : > { %480 = vmatmul.msk.f32.vlgmr.msra.gmra.mxu1 %vm239_vm0, %v224_v11  ;;  %484 = vmatmul.msk.f32.vlgmr.msra.gmra.mxu3 %vm239_vm0, %v228_v12 }
  0x25   : > { %479 = vmatmul.msk.f32.gmra.mxu0 %vm239_vm0, %v223_v13  ;;  %483 = vmatmul.msk.f32.gmra.mxu2 %vm239_vm0, %v227_v14 }
  0x27   : > { %481 = vmatmul.msk.f32.gmra.mxu1 %vm239_vm0, %v225_v15  ;;  %485 = vmatmul.msk.f32.gmra.mxu3 %vm239_vm0, %v229_v16 }
  0x9a   : > { %v281_v17 = vpop.f32.mrf.mxu0 }
  0x9b   : > { %305 = vst [vmem:[%s615_s18] sm:$0xff] %v281_v17  ;;  %v327_v22 = vmul.f32 %v281_v17, %v281_v17 }
  0x9c   : > { %v287_v18 = vpop.f32.mrf.mxu1 }
  0x9d   : > { %307 = vst [vmem:[%s615_s18 + $0x10] sm:$0xff] %v287_v18  ;;  %v329_v26 = vmul.f32 %v287_v18, %v287_v18 }
  0xa0   : > { %v293_v19 = vpop.f32.mrf.mxu2 }
  0xa1   : > { %309 = vst [vmem:[%s615_s18 + $0x20] sm:$0xff] %v293_v19  ;;  %v331_v33 = vmul.f32 %v293_v19, %v293_v19 }
  0xa2   : > { %v284_v20 = vpop.f32.mrf.mxu0  ;;  %v299_v21 = vpop.f32.mrf.mxu3 }
  0xa3   : > { %306 = vst [vmem:[%s615_s18 + $0x8] sm:$0xff] %v284_v20  ;;  %v313_v23 = vadd.f32 %v284_v20, %v281_v17  ;;  %v328_v24 = vmul.f32 %v284_v20, %v284_v20  ;;  %v333_v40 = vmul.f32 %v299_v21, %v299_v21 }
  0xa4   : > { %v290_v25 = vpop.f32.mrf.mxu1  ;;  %311 = vst [vmem:[%s615_s18 + $0x30] sm:$0xff] %v299_v21 }
  0xa5   : > { %v335_v27 = vadd.f32 %v328_v24, %v327_v22  ;;  %308 = vst [vmem:[%s615_s18 + $0x18] sm:$0xff] %v290_v25  ;;  %v314_v28 = vadd.f32 %v313_v23, %v287_v18  ;;  %v330_v29 = vmul.f32 %v290_v25, %v290_v25 }
  0xa7   : > { %v315_v30 = vadd.f32 %v314_v28, %v290_v25  ;;  %v336_v31 = vadd.f32 %v335_v27, %v329_v26 }
  0xa8   : > { %v296_v32 = vpop.f32.mrf.mxu2 }
  0xa9   : > { %v337_v34 = vadd.f32 %v336_v31, %v330_v29  ;;  %310 = vst [vmem:[%s615_s18 + $0x28] sm:$0xff] %v296_v32  ;;  %v316_v35 = vadd.f32 %v315_v30, %v293_v19  ;;  %v332_v36 = vmul.f32 %v296_v32, %v296_v32 }
  0xaa   : > { %v302_v37 = vpop.f32.mrf.mxu3 }
  0xab   : > { %v317_v38 = vadd.f32 %v316_v35, %v296_v32  ;;  %v338_v39 = vadd.f32 %v337_v34, %v331_v33  ;;  %312 = vst [vmem:[%s615_s18 + $0x38] sm:$0xff] %v302_v37  ;;  %v334_v43 = vmul.f32 %v302_v37, %v302_v37 }
  0xad   : > { %v339_v41 = vadd.f32 %v338_v39, %v332_v36  ;;  %v318_v42 = vadd.f32 %v317_v38, %v299_v21 }
  0xaf   : > { %v319_v44 = vadd.f32 %v318_v42, %v302_v37  ;;  %v340_v45 = vadd.f32 %v339_v41, %v333_v40 }
  0xb1   : > { %v320_v46 = vrot.slane %v319_v44, 4  ;;  %v341_v47 = vadd.f32 %v340_v45, %v334_v43 }
  0xb3   : > { %v321_v48 = vadd.f32 %v320_v46, %v319_v44  ;;  %v342_v49 = vrot.slane %v341_v47, 4 }
  0xb5   : > { %v322_v50 = vrot.slane %v321_v48, 2  ;;  %v343_v51 = vadd.f32 %v342_v49, %v341_v47 }
  0xb7   : > { %v323_v52 = vadd.f32 %v322_v50, %v321_v48  ;;  %v344_v53 = vrot.slane %v343_v51, 2 }
  0xb9   : > { %v324_v54 = vrot.slane %v323_v52, 1  ;;  %v345_v55 = vadd.f32 %v344_v53, %v343_v51 }
  0xbb   : > { %v325_v56 = vadd.f32 %v324_v54, %v323_v52  ;;  %v346_v57 = vrot.slane %v345_v55, 1 }
  0xbd   : > { %326 = vst [vmem:[%s217_s22] sm:$0xff] %v325_v56  ;;  %v347_v58 = vadd.f32 %v346_v57, %v345_v55 }
  0xbf   : > { %348 = vst [vmem:[%s221_s25] sm:$0xff] %v347_v58 }
  0xc0 PF: > { %s15_s15 = sadd.s32 1, %s529_s15  }
  0xc1   : > { %p12_p5 = scmp.ge.s32.totalorder %s15_s15, 4  }
  0xc3   :  { %14 = sbr.rel (!%p12_p5) target bundleno = 1 (0x1), region = 82 }

// kernel: resnet_stage_forward.9
= control target key start
LH: loop header
LB: loop body
LE: loop exit
PB: predicated region body
PF: predicated region fallthrough
CT: control target
= control target key end

     0   :  { %s327_s12 = smov 0   ;;  %s350_s0 = inlined_call_operand.vmem [shape: f32[128,128], index: 0, kind: input, shape index: {}]   ;;  %s351_s1 = inlined_call_operand.vmem [shape: f32[1,128], index: 1, kind: input, shape index: {}]   ;;  %s352_s2 = inlined_call_operand.vmem [shape: f32[1,128], index: 2, kind: input, shape index: {}]   ;;  %s353_s3 = inlined_call_operand.vmem [shape: f32[128,128], index: 3, kind: output, shape index: {}]  }
   0x1 LB: > { %s278_s13 = sadd.s32 4294967295, %s305_s12   ;;  %p282_p0 = scmp.ge.s32.totalorder %s305_s12, 1  ;;  %s305_s12 = sphi %s327_s12, %s13_s12  }
   0x2   : > { %p138_p1 = scmp.lt.s32.totalorder %s305_s12, 3 }
   0x4   : > { %p139_p2 = pnand %p282_p0, %p138_p1 }
   0x5   : > { %s283_s14 = sshll.u32 (!%p139_p2), %s278_s13, 3 }
   0x6   : > { %142 = sbr.rel (%p139_p2) target bundleno = 29 (0x1d), region = 32  ;;  %p163_p3 = scmp.lt.s32.totalorder (!%p139_p2), %s283_s14, 15 }
   0xb   : > { %s355_s14 = smov (!%p163_p3, %s283_s14), 15  ;;  %v297_v0 = vld [vmem:[%s351_s1] ss:$0 sm:$0xff] }
   0xc   : > { %s284_s17 = sshll.u32 %s355_s14, 3  ;;  %v298_v1 = vld [vmem:[%s352_s2] ss:$0 sm:$0xff] }
   0xd   : > { %s166_s20 = scalar_lea.vmem %s350_s0, %s284_s17  ;;  %s172_s25 = scalar_lea.vmem %s353_s3, %s284_s17 }
   0xe   : > { %v174_v2 = vld [vmem:[%s166_s20] sm:$0xff]  ;;  %v175_v3 = vld [vmem:[%s166_s20 + $0x8] sm:$0xff]  ;;  %v176_v4 = vld [vmem:[%s166_s20 + $0x10] sm:$0xff] }
   0xf   : > { %v186_v5 = vmul.f32 %v297_v0, %v174_v2  ;;  %v187_v6 = vmul.f32 %v297_v0, %v175_v3  ;;  %v188_v7 = vmul.f32 %v297_v0, %v176_v4  ;;  %v177_v8 = vld [vmem:[%s166_s20 + $0x18] sm:$0xff]  ;;  %v178_v9 = vld [vmem:[%s166_s20 + $0x20] sm:$0xff]  ;;  %v179_v10 = vld [vmem:[%s166_s20 + $0x28] sm:$0xff] }
  0x10   : > { %v189_v11 = vmul.f32 %v297_v0, %v177_v8  ;;  %v190_v12 = vmul.f32 %v297_v0, %v178_v9  ;;  %v191_v13 = vmul.f32 %v297_v0, %v179_v10  ;;  %v180_v14 = vld [vmem:[%s166_s20 + $0x30] sm:$0xff]  ;;  %v181_v15 = vld [vmem:[%s166_s20 + $0x38] sm:$0xff] }
  0x11   : > { %v198_v16 = vadd.f32 %v298_v1, %v186_v5  ;;  %v199_v17 = vadd.f32 %v298_v1, %v187_v6  ;;  %v200_v18 = vadd.f32 %v298_v1, %v188_v7  ;;  %v192_v19 = vmul.f32 %v297_v0, %v180_v14 }
  0x12   : > { %v201_v20 = vadd.f32 %v298_v1, %v189_v11  ;;  %v202_v21 = vadd.f32 %v298_v1, %v190_v12  ;;  %v203_v22 = vadd.f32 %v298_v1, %v191_v13  ;;  %v193_v23 = vmul.f32 %v297_v0, %v181_v15 }
  0x13   : > { %v206_v24 = vmax.f32 %v198_v16, 0.0  ;;  %v207_v25 = vmax.f32 %v199_v17, 0.0  ;;  %v208_v26 = vmax.f32 %v200_v18, 0.0  ;;  %v204_v27 = vadd.f32 %v298_v1, %v192_v19 }
  0x14   : > { %v209_v28 = vmax.f32 %v201_v20, 0.0  ;;  %v205_v29 = vadd.f32 %v298_v1, %v193_v23  ;;  %v210_v30 = vmax.f32 %v202_v21, 0.0  ;;  %v211_v31 = vmax.f32 %v203_v22, 0.0 }
  0x15   : > { %214 = vst [vmem:[%s172_s25] sm:$0xff] %v206_v24  ;;  %v212_v32 = vmax.f32 %v204_v27, 0.0 }
  0x16   : > { %215 = vst [vmem:[%s172_s25 + $0x8] sm:$0xff] %v207_v25  ;;  %v213_v33 = vmax.f32 %v205_v29, 0.0 }
  0x17   : > { %216 = vst [vmem:[%s172_s25 + $0x10] sm:$0xff] %v208_v26 }
  0x18   : > { %217 = vst [vmem:[%s172_s25 + $0x18] sm:$0xff] %v209_v28 }
  0x19   : > { %218 = vst [vmem:[%s172_s25 + $0x20] sm:$0xff] %v210_v30 }
  0x1a   : > { %219 = vst [vmem:[%s172_s25 + $0x28] sm:$0xff] %v211_v31 }
  0x1b   : > { %220 = vst [vmem:[%s172_s25 + $0x30] sm:$0xff] %v212_v32 }
  0x1c   : > { %221 = vst [vmem:[%s172_s25 + $0x38] sm:$0xff] %v213_v33 }
  0x1d PF: > { %s13_s12 = sadd.s32 1, %s305_s12  }
  0x1e   : > { %p10_p4 = scmp.ge.s32.totalorder %s13_s12, 4  }
  0x20   :  { %12 = sbr.rel (!%p10_p4) target bundleno = 1 (0x1), region = 62 }

// kernel: resnet_stage_forward.11
= control target key start
LH: loop header
LB: loop body
LE: loop exit
PB: predicated region body
PF: predicated region fallthrough
CT: control target
= control target key end

     0   :  { %s411_s15 = smov 0   ;;  %s457_s0 = inlined_call_operand.vmem [shape: f32[128,128], index: 0, kind: input, shape index: {}]   ;;  %s458_s1 = inlined_call_operand.vmem [shape: f32[1,128], index: 1, kind: input, shape index: {}]   ;;  %s459_s2 = inlined_call_operand.vmem [shape: f32[1,128], index: 2, kind: input, shape index: {}]   ;;  %s460_s3 = inlined_call_operand.vmem [shape: f32[128,128], index: 3, kind: input, shape index: {}]   ;;  %s461_s4 = inlined_call_operand.vmem [shape: f32[128,128], index: 4, kind: output, shape index: {}]  }
   0x1 LB: > { %s355_s16 = sadd.s32 4294967295, %s384_s15   ;;  %p359_p0 = scmp.ge.s32.totalorder %s384_s15, 1  ;;  %s384_s15 = sphi %s411_s15, %s14_s15  }
   0x2   : > { %p174_p1 = scmp.lt.s32.totalorder %s384_s15, 3 }
   0x4   : > { %p175_p2 = pnand %p359_p0, %p174_p1 }
   0x5   : > { %s360_s17 = sshll.u32 (!%p175_p2), %s355_s16, 3 }
   0x6   : > { %178 = sbr.rel (%p175_p2) target bundleno = 31 (0x1f), region = 36  ;;  %p206_p3 = scmp.lt.s32.totalorder (!%p175_p2), %s360_s17, 15 }
   0xb   : > { %s463_s17 = smov (!%p206_p3, %s360_s17), 15  ;;  %v376_v0 = vld [vmem:[%s458_s1] ss:$0 sm:$0xff] }
   0xc   : > { %s361_s20 = sshll.u32 %s463_s17, 3  ;;  %v377_v1 = vld [vmem:[%s459_s2] ss:$0 sm:$0xff] }
   0xd   : > { %s209_s23 = scalar_lea.vmem %s457_s0, %s361_s20  ;;  %s431_s28 = scalar_lea.vmem %s460_s3, %s361_s20 }
   0xe   : > { %v223_v2 = vld [vmem:[%s209_s23] sm:$0xff]  ;;  %v224_v3 = vld [vmem:[%s209_s23 + $0x8] sm:$0xff]  ;;  %v225_v6 = vld [vmem:[%s209_s23 + $0x10] sm:$0xff]  ;;  %s439_s5 = scalar_lea.vmem %s461_s4, %s361_s20 }
   0xf   : > { %v235_v4 = vmul.f32 %v376_v0, %v223_v2  ;;  %v236_v5 = vmul.f32 %v376_v0, %v224_v3  ;;  %v237_v7 = vmul.f32 %v376_v0, %v225_v6  ;;  %v226_v8 = vld [vmem:[%s209_s23 + $0x18] sm:$0xff]  ;;  %v227_v9 = vld [vmem:[%s209_s23 + $0x20] sm:$0xff]  ;;  %v228_v15 = vld [vmem:[%s209_s23 + $0x28] sm:$0xff] }
  0x10   : > { %v263_v11 = vld [vmem:[%s431_s28] sm:$0xff]  ;;  %v238_v13 = vmul.f32 %v376_v0, %v226_v8  ;;  %v239_v14 = vmul.f32 %v376_v0, %v227_v9  ;;  %v264_v16 = vld [vmem:[%s431_s28 + $0x8] sm:$0xff]  ;;  %v240_v18 = vmul.f32 %v376_v0, %v228_v15  ;;  %v229_v19 = vld [vmem:[%s209_s23 + $0x30] sm:$0xff] }
  0x11   : > { %v247_v10 = vadd.f32 %v377_v1, %v235_v4  ;;  %v248_v12 = vadd.f32 %v377_v1, %v236_v5  ;;  %v249_v17 = vadd.f32 %v377_v1, %v237_v7  ;;  %v230_v20 = vld [vmem:[%s209_s23 + $0x38] sm:$0xff]  ;;  %v265_v23 = vld [vmem:[%s431_s28 + $0x10] sm:$0xff]  ;;  %v267_v28 = vld [vmem:[%s431_s28 + $0x20] sm:$0xff]  ;;  %v241_v30 = vmul.f32 %v376_v0, %v229_v19 }
  0x12   : > { %v250_v24 = vadd.f32 %v377_v1, %v238_v13  ;;  %v251_v25 = vadd.f32 %v377_v1, %v239_v14  ;;  %v266_v27 = vld [vmem:[%s431_s28 + $0x18] sm:$0xff]  ;;  %v252_v29 = vadd.f32 %v377_v1, %v240_v18  ;;  %v242_v31 = vmul.f32 %v376_v0, %v230_v20  ;;  %v268_v36 = vld [vmem:[%s431_s28 + $0x28] sm:$0xff]  ;;  %v269_v43 = vld [vmem:[%s431_s28 + $0x30] sm:$0xff] }
  0x13   : > { %v255_v21 = vmax.f32 %v247_v10, 0.0  ;;  %v256_v22 = vmax.f32 %v248_v12, 0.0  ;;  %v257_v26 = vmax.f32 %v249_v17, 0.0  ;;  %v253_v39 = vadd.f32 %v377_v1, %v241_v30  ;;  %v270_v44 = vld [vmem:[%s431_s28 + $0x38] sm:$0xff] }
  0x14   : > { %v258_v34 = vmax.f32 %v250_v24, 0.0  ;;  %v259_v35 = vmax.f32 %v251_v25, 0.0  ;;  %v260_v38 = vmax.f32 %v252_v29, 0.0  ;;  %v254_v40 = vadd.f32 %v377_v1, %v242_v31 }
  0x15   : > { %v271_v32 = vadd.f32 %v263_v11, %v255_v21  ;;  %v272_v33 = vadd.f32 %v264_v16, %v256_v22  ;;  %v273_v37 = vadd.f32 %v265_v23, %v257_v26  ;;  %v261_v46 = vmax.f32 %v253_v39, 0.0 }
  0x16   : > { %v274_v41 = vadd.f32 %v266_v27, %v258_v34  ;;  %v275_v42 = vadd.f32 %v267_v28, %v259_v35  ;;  %v276_v45 = vadd.f32 %v268_v36, %v260_v38  ;;  %v262_v47 = vmax.f32 %v254_v40, 0.0 }
  0x17   : > { %279 = vst [vmem:[%s439_s5] sm:$0xff] %v271_v32  ;;  %v277_v48 = vadd.f32 %v269_v43, %v261_v46 }
  0x18   : > { %280 = vst [vmem:[%s439_s5 + $0x8] sm:$0xff] %v272_v33  ;;  %v278_v49 = vadd.f32 %v270_v44, %v262_v47 }
  0x19   : > { %281 = vst [vmem:[%s439_s5 + $0x10] sm:$0xff] %v273_v37 }
  0x1a   : > { %282 = vst [vmem:[%s439_s5 + $0x18] sm:$0xff] %v274_v41 }
  0x1b   : > { %283 = vst [vmem:[%s439_s5 + $0x20] sm:$0xff] %v275_v42 }
  0x1c   : > { %284 = vst [vmem:[%s439_s5 + $0x28] sm:$0xff] %v276_v45 }
  0x1d   : > { %285 = vst [vmem:[%s439_s5 + $0x30] sm:$0xff] %v277_v48 }
  0x1e   : > { %286 = vst [vmem:[%s439_s5 + $0x38] sm:$0xff] %v278_v49 }
  0x1f PF: > { %s14_s15 = sadd.s32 1, %s384_s15  }
  0x20   : > { %p11_p4 = scmp.ge.s32.totalorder %s14_s15, 4  }
  0x22   :  { %13 = sbr.rel (!%p11_p4) target bundleno = 1 (0x1), region = 69 }

</bundles_post_ra>
